<compile_context>
chip_gen: v5e
topology: v5e:2x2
jax: 0.10.0
libtpu: 0.0.40
codegen_flags: <defaults>
</compile_context>

<pallas_src>
import jax
import jax.numpy as jnp
from jax import lax
from jax.experimental import pallas as pl
from jax.experimental.pallas import tpu as pltpu


def _round_up(x, m):
    return ((x + m - 1) // m) * m


def _vmem_capacity_bytes():
    try:
        return int(pltpu.get_tpu_info().vmem_capacity_bytes)
    except Exception:
        return 64 * 1024 * 1024  # conservative default (v7x per-core VMEM)


# ----------------------------------------------------------------------------
# Generic tiled matmul + bias kernel (hoisted input projection and FC / vocab
# projection).  Large, lane-dense tiles; f32 accumulation.
# ----------------------------------------------------------------------------
def _matmul_bias_kernel(x_ref, w_ref, b_ref, o_ref, acc_ref):
    k = pl.program_id(2)

    @pl.when(k == 0)
    def _():
        acc_ref[...] = jnp.zeros_like(acc_ref)

    acc_ref[...] += jnp.dot(x_ref[...], w_ref[...],
                            preferred_element_type=jnp.float32)

    @pl.when(k == pl.num_programs(2) - 1)
    def _():
        o_ref[...] = (acc_ref[...] + b_ref[...]).astype(o_ref.dtype)


def matmul_bias_pallas(x, w, b, *, tm=512, tn=1024, tk=512):
    """x: (M, K), w: (K, N), b: (N,) -> (M, N), f32 accumulation."""
    M, K = x.shape
    K2, N = w.shape
    assert K == K2

    # Tile sizes capped at the (aligned) problem dims; multiples of (8, 128).
    tm = min(tm, _round_up(M, 8))
    tk = min(tk, _round_up(K, 128))
    tn = min(tn, _round_up(N, 128))
    Mp, Kp, Np = _round_up(M, tm), _round_up(K, tk), _round_up(N, tn)

    xp = jnp.pad(x, ((0, Mp - M), (0, Kp - K))) if (Mp, Kp) != (M, K) else x
    wp = jnp.pad(w, ((0, Kp - K), (0, Np - N))) if (Kp, Np) != (K, N) else w
    bp = (jnp.pad(b, (0, Np - N)) if Np != N else b).reshape(1, Np)

    # VMEM budget: 2 bufs each for x/w/out tiles + f32 accumulator + bias.
    cap = _vmem_capacity_bytes()
    footprint = 4 * (2 * tm * tk + 2 * tk * tn + 3 * tm * tn + 2 * tn)
    vmem_limit = int(min(max(footprint + 8 * 1024 * 1024, 24 * 1024 * 1024),
                         cap * 9 // 10))

    out = pl.pallas_call(
        _matmul_bias_kernel,
        out_shape=jax.ShapeDtypeStruct((Mp, Np), x.dtype),
        grid_spec=pltpu.PrefetchScalarGridSpec(
            num_scalar_prefetch=0,
            grid=(Mp // tm, Np // tn, Kp // tk),
            in_specs=[
                pl.BlockSpec((tm, tk), lambda i, j, k: (i, k)),
                pl.BlockSpec((tk, tn), lambda i, j, k: (k, j)),
                pl.BlockSpec((1, tn), lambda i, j, k: (0, j)),
            ],
            out_specs=pl.BlockSpec((tm, tn), lambda i, j, k: (i, j)),
            scratch_shapes=[pltpu.VMEM((tm, tn), jnp.float32)],
        ),
        compiler_params=pltpu.CompilerParams(
            dimension_semantics=("parallel", "parallel", "arbitrary"),
            vmem_limit_bytes=vmem_limit,
        ),
    )(xp, wp, bp)
    return out[:M, :N]


# ----------------------------------------------------------------------------
# Recurrent LSTM kernel: consumes precomputed input pre-activations gates_x
# (gate order [i, f, o, g]; i/f/o weight columns AND bias pre-scaled by 0.5 so
# a single tanh implements sigmoid via sigmoid(z) = 0.5*(tanh(z/2)+1)).
# Emits the hidden-state sequence.
# ----------------------------------------------------------------------------
def _lstm_recurrent_kernel(gx_ref, whh_ref, h_out_ref, h_scr, c_scr):
    # grid = (batch blocks [parallel], time blocks [arbitrary / serial]).
    @pl.when(pl.program_id(1) == 0)
    def _():
        h_scr[...] = jnp.zeros_like(h_scr)
        c_scr[...] = jnp.zeros_like(c_scr)

    tc = gx_ref.shape[0]
    H = h_scr.shape[1]
    whh = whh_ref[...]                            # (H, 4H), single-buffered resident

    def step(i, carry):
        h, c = carry
        # TODO(synk): weight-stationary MXU driving (matmul_push_rhs /
        # matmul_acc_lhs) to avoid re-pushing W_hh on every serial step.
        gates = gx_ref[i] + jnp.dot(h, whh, preferred_element_type=jnp.float32)
        t = jnp.tanh(gates)                       # one EUP pass over (Bblk, 4H)
        sig = 0.5 * (t[:, :3 * H] + 1.0)          # sigmoid(i), sigmoid(f), sigmoid(o)
        i_g = sig[:, 0:H]
        f_g = sig[:, H:2 * H]
        o_g = sig[:, 2 * H:3 * H]
        g_g = t[:, 3 * H:4 * H]                   # tanh gate
        c_new = f_g * c + i_g * g_g
        h_new = o_g * jnp.tanh(c_new)
        # Lane-dense store when H % 128 == 0 (realistic hidden sizes).
        # TODO(synk): for H < 128, accumulate the tc steps into a (Bblk, tc*H)
        # lane-dense slab and write once per time block.
        h_out_ref[i] = h_new
        return (h_new, c_new)

    # Value-carried h/c: no per-step scratch round trips on the serial critical
    # path, and fori_loop keeps live ranges bounded vs a deep static unroll.
    h_fin, c_fin = lax.fori_loop(0, tc, step, (h_scr[...], c_scr[...]),
                                 unroll=min(4, tc))
    h_scr[...] = h_fin                            # carry across time blocks
    c_scr[...] = c_fin


def _pick_time_block(T, bblk, H, budget):
    """Largest tc (<=64) whose footprint fits the VMEM budget, preferring
    divisors of T so no padded (wasted) serial steps are executed."""
    fixed = H * 4 * H * 4 + 2 * bblk * H * 4          # W_hh (x1) + h/c scratch
    per_tc = bblk * 4 * H * 4 * 2 + bblk * H * 4 * 2  # gates_x x2 + h_out x2
    avail = max(budget - fixed, per_tc)
    tc_max = int(max(1, min(T, 64, avail // per_tc)))
    for d in range(tc_max, 0, -1):
        if T % d == 0:
            if d >= max(1, tc_max // 2):
                return d
            break
    return tc_max


def lstm_recurrence_pallas(gates_x, w_hh_t):
    """gates_x: (T, B, 4H) f32 pre-activations (bias folded in, sigmoid-gate
    columns pre-scaled by 0.5).  w_hh_t: (H, 4H) (same order/scaling).
    Returns the hidden-state sequence (T, B, H) f32."""
    T, B, G4 = gates_x.shape
    H = w_hh_t.shape[0]

    # Batch blocking: pad B to a multiple of 8 (f32 sublane); blocks of <= 64
    # rows let v7x's two TensorCores split the independent batch rows.
    bblk = min(_round_up(B, 8), 64)
    Bp = _round_up(B, bblk)

    # VMEM-aware time-block size + scoped limit (v7x has only 64 MiB VMEM).
    cap = _vmem_capacity_bytes()
    budget = min(40 * 1024 * 1024, cap // 2)
    tc = _pick_time_block(T, bblk, H, budget)
    Tp = _round_up(T, tc)
    vmem_limit = int(min(budget + 8 * 1024 * 1024, cap * 9 // 10))

    gx = gates_x
    if (Tp, Bp) != (T, B):
        gx = jnp.pad(gx, ((0, Tp - T), (0, Bp - B), (0, 0)))

    def build(single_buffer_whh):
        whh_kwargs = {"pipeline_mode": pl.Buffered(1)} if single_buffer_whh else {}
        return pl.pallas_call(
            _lstm_recurrent_kernel,
            out_shape=jax.ShapeDtypeStruct((Tp, Bp, H), jnp.float32),
            grid_spec=pltpu.PrefetchScalarGridSpec(
                num_scalar_prefetch=0,
                grid=(Bp // bblk, Tp // tc),
                in_specs=[
                    pl.BlockSpec((tc, bblk, G4), lambda b, t: (t, b, 0)),
                    pl.BlockSpec((H, G4), lambda b, t: (0, 0), **whh_kwargs),
                ],
                out_specs=pl.BlockSpec((tc, bblk, H), lambda b, t: (t, b, 0)),
                scratch_shapes=[
                    pltpu.VMEM((bblk, H), jnp.float32),   # h state
                    pltpu.VMEM((bblk, H), jnp.float32),   # c state
                ],
            ),
            compiler_params=pltpu.CompilerParams(
                dimension_semantics=("parallel", "arbitrary"),
                vmem_limit_bytes=vmem_limit,
            ),
        )

    try:
        h_seq = build(True)(gx, w_hh_t)
    except Exception:
        # Fallback if Buffered(1) is rejected by this jaxlib/Mosaic version.
        h_seq = build(False)(gx, w_hh_t)
    return h_seq[:T, :B, :]


# ----------------------------------------------------------------------------
# Wrapper: PyTorch-equivalent forward.
# ----------------------------------------------------------------------------
def _prep_lstm_weights(w_ih, w_hh, b_ih, b_hh, H):
    """Reorder gate rows [i,f,g,o] -> [i,f,o,g]; scale sigmoid gates by 0.5."""
    def reorder(w):  # (4H, X)
        i, f, g, o = w[0:H], w[H:2 * H], w[2 * H:3 * H], w[3 * H:4 * H]
        return jnp.concatenate([0.5 * i, 0.5 * f, 0.5 * o, g], axis=0)

    b = b_ih + b_hh
    b_r = jnp.concatenate(
        [0.5 * b[0:H], 0.5 * b[H:2 * H], 0.5 * b[3 * H:4 * H], b[2 * H:3 * H]])
    return reorder(w_ih), reorder(w_hh), b_r


def caption_decoder_forward(params, image_features, captions):
    """image_features: (B, E) f32, captions: (B, L) int32 -> (B, L, V) f32."""
    H = params["w_hh"].shape[1]
    V, E = params["embedding"].shape
    B, L = captions.shape

    # Time-major embedding gather (no full-tensor transpose of the LSTM input).
    # TODO(synk): fuse gather + concat into the input-projection kernel via
    # scalar-prefetched caption ids and a pl.Element row-gather BlockSpec.
    emb_t = params["embedding"][captions[:, :-1].T]              # (L-1, B, E)
    inputs_tbe = jnp.concatenate(
        [image_features[None, :, :], emb_t], axis=0)             # (T, B, E)
    T = inputs_tbe.shape[0]

    w_ih_r, w_hh_r, b_r = _prep_lstm_weights(
        params["w_ih"], params["w_hh"], params["b_ih"], params["b_hh"], H)

    # (1) Hoisted input projection: one large MXU matmul over all T*B rows.
    gates_x = matmul_bias_pallas(
        inputs_tbe.reshape(T * B, E), w_ih_r.T, b_r).reshape(T, B, 4 * H)

    # (2) Serial recurrence (only h @ W_hh^T + gate math per step).
    h_seq = lstm_recurrence_pallas(gates_x, w_hh_r.T)            # (T, B, H)

    # (3) Deferred FC projection.  Single fused slice+transpose on h (H << V);
    #     the reshape of the contiguous result is free; never transpose logits.
    h_bt = jnp.transpose(h_seq, (1, 0, 2)).reshape(B * T, H)
    logits = matmul_bias_pallas(h_bt, params["w_fc"].T, params["b_fc"])
    return logits.reshape(B, T, V)


# ----------------------------------------------------------------------------
# Pure-JAX reference (original gate order / jax.nn.sigmoid) for verification.
# ----------------------------------------------------------------------------
def caption_decoder_reference(params, image_features, captions):
    emb = params["embedding"][captions[:, :-1]]
    inputs = jnp.concatenate([image_features[:, None, :], emb], axis=1)
    B = inputs.shape[0]
    H = params["w_hh"].shape[1]

    def step(carry, x_t):
        h, c = carry
        gates = (x_t @ params["w_ih"].T + params["b_ih"]
                 + h @ params["w_hh"].T + params["b_hh"])
        i_g, f_g, g_g, o_g = jnp.split(gates, 4, axis=-1)
        i_g, f_g, o_g = jax.nn.sigmoid(i_g), jax.nn.sigmoid(f_g), jax.nn.sigmoid(o_g)
        g_g = jnp.tanh(g_g)
        c_new = f_g * c + i_g * g_g
        h_new = o_g * jnp.tanh(c_new)
        return (h_new, c_new), h_new

    init = (jnp.zeros((B, H), jnp.float32), jnp.zeros((B, H), jnp.float32))
    _, h_seq = jax.lax.scan(step, init, jnp.transpose(inputs, (1, 0, 2)))
    h_seq = jnp.transpose(h_seq, (1, 0, 2))                      # (B, T, H)
    return h_seq @ params["w_fc"].T + params["b_fc"]


def init_params(key, embedding_dim, hidden_dim, vocab_size):
    ks = jax.random.split(key, 7)
    s = 0.1
    return {
        "embedding": s * jax.random.normal(ks[0], (vocab_size, embedding_dim), jnp.float32),
        "w_ih": s * jax.random.normal(ks[1], (4 * hidden_dim, embedding_dim), jnp.float32),
        "w_hh": s * jax.random.normal(ks[2], (4 * hidden_dim, hidden_dim), jnp.float32),
        "b_ih": s * jax.random.normal(ks[3], (4 * hidden_dim,), jnp.float32),
        "b_hh": s * jax.random.normal(ks[4], (4 * hidden_dim,), jnp.float32),
        "w_fc": s * jax.random.normal(ks[5], (vocab_size, hidden_dim), jnp.float32),
        "b_fc": s * jax.random.normal(ks[6], (vocab_size,), jnp.float32),
    }


if __name__ == "__main__":
    # Small, forward-consistent shapes.
    B = 2            # batch
    E = 32           # embedding_dim
    H = 32           # hidden_dim
    V = 128          # vocab_size
    L = 8            # caption length -> LSTM sequence length T = L

    key = jax.random.PRNGKey(0)
    k_par, k_img, k_cap = jax.random.split(key, 3)

    params = init_params(k_par, E, H, V)
    image_features = jax.random.normal(k_img, (B, E), jnp.float32)
    captions = jax.random.randint(k_cap, (B, L), 0, V, dtype=jnp.int32)

    out = caption_decoder_forward(params, image_features, captions)
    out = jax.block_until_ready(out)

    ref = caption_decoder_reference(params, image_features, captions)
    ref = jax.block_until_ready(ref)

    assert out.shape == (B, L, V), out.shape
    assert jnp.allclose(out, ref, atol=1e-4, rtol=1e-4), "mismatch vs reference"

    print("KERNEL_OK")
</pallas_src>

<mosaic_0001>
module attributes {stable_mosaic.version = 11 : i64} {
  func.func @_matmul_bias_kernel(%arg0: i32, %arg1: i32, %arg2: i32, %arg3: memref<16x128xf32, #tpu.memory_space<vmem>>, %arg4: memref<128x128xf32, #tpu.memory_space<vmem>>, %arg5: memref<1x128xf32, #tpu.memory_space<vmem>>, %arg6: memref<16x128xf32, #tpu.memory_space<vmem>>, %arg7: memref<16x128xf32, #tpu.memory_space<vmem>>) attributes {dimension_semantics = [#tpu.dimension_semantics<parallel>, #tpu.dimension_semantics<parallel>, #tpu.dimension_semantics<arbitrary>], iteration_bounds = array<i64: 1, 1, 1>, scalar_prefetch = 0 : i64, scratch_operands = 1 : i64, tpu.core_type = #tpu.core_type<tc>, window_params = [{transform_indices = @transform_0, window_bounds = array<i64: 16, 128>}, {transform_indices = @transform_1, window_bounds = array<i64: 128, 128>}, {transform_indices = @transform_2, window_bounds = array<i64: 1, 128>}, {transform_indices = @transform_3, window_bounds = array<i64: 16, 128>}]} {
    %c0_i32 = arith.constant 0 : i32
    %0 = arith.cmpi eq, %arg2, %c0_i32 : i32
    %1 = arith.extui %0 : i1 to i32
    %c0_i32_0 = arith.constant 0 : i32
    %2 = arith.cmpi ne, %1, %c0_i32_0 : i32
    scf.if %2 {
      %cst_10 = arith.constant 0.000000e+00 : f32
      %12 = vector.broadcast %cst_10 : f32 to vector<16x128xf32>
      %c0_11 = arith.constant 0 : index
      %c0_12 = arith.constant 0 : index
      %13 = vector.load %arg7[%c0_11, %c0_12] : memref<16x128xf32, #tpu.memory_space<vmem>>, vector<16x128xf32>
      tpu.vector_store %arg7[%c0_11, %c0_12], %12 {strides = array<i32>} : memref<16x128xf32, #tpu.memory_space<vmem>>, vector<16x128xf32>,
    } else {
    }
    %c0 = arith.constant 0 : index
    %c0_1 = arith.constant 0 : index
    %3 = vector.load %arg7[%c0, %c0_1] : memref<16x128xf32, #tpu.memory_space<vmem>>, vector<16x128xf32>
    %c0_2 = arith.constant 0 : index
    %c0_3 = arith.constant 0 : index
    %4 = vector.load %arg3[%c0_2, %c0_3] : memref<16x128xf32, #tpu.memory_space<vmem>>, vector<16x128xf32>
    %c0_4 = arith.constant 0 : index
    %c0_5 = arith.constant 0 : index
    %5 = vector.load %arg4[%c0_4, %c0_5] : memref<128x128xf32, #tpu.memory_space<vmem>>, vector<128x128xf32>
    %cst = arith.constant dense<0.000000e+00> : vector<16x128xf32>
    %6 = tpu.matmul %4, %5, %cst {dimension_numbers = #tpu.dot_dimension_numbers<[1], [0], [0], [1], [0, 0, 1, 1], [], []>} : vector<16x128xf32>, vector<128x128xf32>, vector<16x128xf32> -> vector<16x128xf32>
    %7 = arith.addf %3, %6 : vector<16x128xf32>
    %c0_6 = arith.constant 0 : index
    %c0_7 = arith.constant 0 : index
    %8 = vector.load %arg7[%c0_6, %c0_7] : memref<16x128xf32, #tpu.memory_space<vmem>>, vector<16x128xf32>
    tpu.vector_store %arg7[%c0_6, %c0_7], %7 {strides = array<i32>} : memref<16x128xf32, #tpu.memory_space<vmem>>, vector<16x128xf32>,
    %c0_i32_8 = arith.constant 0 : i32
    %9 = arith.cmpi eq, %arg2, %c0_i32_8 : i32
    %10 = arith.extui %9 : i1 to i32
    %c0_i32_9 = arith.constant 0 : i32
    %11 = arith.cmpi ne, %10, %c0_i32_9 : i32
    scf.if %11 {
      %c0_10 = arith.constant 0 : index
      %c0_11 = arith.constant 0 : index
      %12 = vector.load %arg7[%c0_10, %c0_11] : memref<16x128xf32, #tpu.memory_space<vmem>>, vector<16x128xf32>
      %c0_12 = arith.constant 0 : index
      %c0_13 = arith.constant 0 : index
      %13 = vector.load %arg5[%c0_12, %c0_13] : memref<1x128xf32, #tpu.memory_space<vmem>>, vector<1x128xf32>
      %14 = vector.broadcast %13 : vector<1x128xf32> to vector<16x128xf32>
      %15 = arith.addf %12, %14 : vector<16x128xf32>
      %c0_14 = arith.constant 0 : index
      %c0_15 = arith.constant 0 : index
      %16 = vector.load %arg6[%c0_14, %c0_15] : memref<16x128xf32, #tpu.memory_space<vmem>>, vector<16x128xf32>
      tpu.vector_store %arg6[%c0_14, %c0_15], %15 {strides = array<i32>} : memref<16x128xf32, #tpu.memory_space<vmem>>, vector<16x128xf32>,
    } else {
    }
    return
  }
  func.func @transform_0(%arg0: i32, %arg1: i32, %arg2: i32) -> (i32, i32) {
    %c0_i32 = arith.constant 0 : i32
    return %arg0, %arg2 : i32, i32
  }
  func.func @transform_1(%arg0: i32, %arg1: i32, %arg2: i32) -> (i32, i32) {
    %c0_i32 = arith.constant 0 : i32
    return %arg2, %arg1 : i32, i32
  }
  func.func @transform_2(%arg0: i32, %arg1: i32, %arg2: i32) -> (i32, i32) {
    %c0_i32 = arith.constant 0 : i32
    %c0_i32_0 = arith.constant 0 : i32
    return %c0_i32, %arg1 : i32, i32
  }
  func.func @transform_3(%arg0: i32, %arg1: i32, %arg2: i32) -> (i32, i32) {
    %c0_i32 = arith.constant 0 : i32
    return %arg0, %arg1 : i32, i32
  }
}

</mosaic_0001>

<bundles_post_ra>
// kernel: tpu_custom_call.1
= control target key start
LH: loop header
LB: loop body
LE: loop exit
PB: predicated region body
PF: predicated region fallthrough
CT: control target
= control target key end

     0   :  { %8 = vsyncpa [#allocation4], 0  ;;  %s279_s0 = inlined_call_operand.hbm [shape: f32[16,128], index: 0, kind: input, shape index: {}]   ;;  %s280_s1 = inlined_call_operand.hbm [shape: f32[128,128], index: 1, kind: input, shape index: {}]   ;;  %s281_s2 = inlined_call_operand.vmem [shape: f32[1,128], index: 2, kind: input, shape index: {}]   ;;  %s282_s3 = inlined_call_operand.hbm [shape: f32[16,128], index: 3, kind: output, shape index: {}]  }
   0x1   :  { %9 = vsyncpa [#allocation7], 0 }
   0x2   :  { %10 = vsyncpa [#allocation5], 0  ;;  %s15_s14 = sshll.u32 %s279_s0, 4  ;;  %s233_s15 = smov [#allocation3]   ;;  %s16_s14 = int_to_ptr.hbm [resolvable:$true] %s15_s14 }
   0x3   :  { %s17_s16 = sshll.u32 %s233_s15, 4  ;;  %s28_s19 = sshll.u32 %s280_s1, 4  ;;  %s18_s16 = int_to_ptr.vmem [resolvable:$true] %s17_s16  ;;  %s29_s19 = int_to_ptr.hbm [resolvable:$true] %s28_s19 }
   0x4   :  { %s234_s20 = smov 128   ;;  %s235_s21 = smov 8  }
   0x5   :  { %23 = dma.hbm_to_vmem [thread:$0]  %s16_s14, 256, %s18_s16, [#allocation4], %s234_s20, %s234_s20, %s235_s21  }
   0x6   :  { %s236_s22 = smov [#allocation6]  }
   0x7   :  { %s30_s23 = sshll.u32 %s236_s22, 4  ;;  %s31_s23 = int_to_ptr.vmem [resolvable:$true] %s30_s23 }
   0x8   :  { %36 = dma.hbm_to_vmem [thread:$0]  %s29_s19, 2048, %s31_s23, [#allocation7], %s234_s20, %s234_s20, %s235_s21  }
   0x9   :  { %227 = dma.done.wait [#allocation4], 256  }
   0xa   :  { %228 = vsyncadd [#allocation4], 4294967040 }
   0xb   :  { %229 = dma.done.wait [#allocation7], 2048  }
   0xc   :  { %230 = vsyncadd [#allocation7], 4294965248  ;;  %v72_v0 = vld [vmem:[#allocation6 + $0x78] sm:$0xff]  ;;  %v71_v1 = vld [vmem:[#allocation6 + $0x70] sm:$0xff]  ;;  %s237_s24 = smov [#allocation8]   ;;  %s119_s28 = sshll.u32 %s282_s3, 4  ;;  %s120_s28 = int_to_ptr.hbm [resolvable:$true] %s119_s28 }
   0xd   :  { %73 = vmatpush.msra.mxu0 %v72_v0  ;;  %133 = vmatpush.msra.mxu1 %v72_v0  ;;  %v70_v2 = vld [vmem:[#allocation6 + $0x68] sm:$0xff]  ;;  %v69_v3 = vld [vmem:[#allocation6 + $0x60] sm:$0xff]  ;;  %v68_v4 = vld [vmem:[#allocation6 + $0x58] sm:$0xff]  ;;  %s117_s25 = sshll.u32 %s237_s24, 4  ;;  %s118_s25 = int_to_ptr.vmem [resolvable:$true] %s117_s25 }
   0xe   :  { %v67_v5 = vld [vmem:[#allocation6 + $0x50] sm:$0xff]  ;;  %v66_v6 = vld [vmem:[#allocation6 + $0x48] sm:$0xff]  ;;  %v65_v7 = vld [vmem:[#allocation6 + $0x40] sm:$0xff] }
   0xf   :  { %74 = vmatpush.msra.mxu0 %v71_v1  ;;  %134 = vmatpush.msra.mxu1 %v71_v1  ;;  %v64_v8 = vld [vmem:[#allocation6 + $0x38] sm:$0xff]  ;;  %v63_v9 = vld [vmem:[#allocation6 + $0x30] sm:$0xff]  ;;  %v62_v10 = vld [vmem:[#allocation6 + $0x28] sm:$0xff] }
  0x10   :  { %v61_v11 = vld [vmem:[#allocation6 + $0x20] sm:$0xff]  ;;  %v60_v12 = vld [vmem:[#allocation6 + $0x18] sm:$0xff]  ;;  %v59_v13 = vld [vmem:[#allocation6 + $0x10] sm:$0xff] }
  0x11   :  { %75 = vmatpush.msra.mxu0 %v70_v2  ;;  %135 = vmatpush.msra.mxu1 %v70_v2  ;;  %v58_v14 = vld [vmem:[#allocation6 + $0x8] sm:$0xff]  ;;  %v57_v15 = vld [vmem:[#allocation6] sm:$0xff]  ;;  %v55_v16 = vld [vmem:[#allocation3] sm:$0xff] }
  0x12   :  { %v56_v17 = vld [vmem:[#allocation3 + $0x8] sm:$0xff]  ;;  %v154_v18 = vld [vmem:[%s281_s2] ss:$0 sm:$0xff] }
  0x13   :  { %76 = vmatpush.msra.mxu0 %v69_v3  ;;  %136 = vmatpush.msra.mxu1 %v69_v3 }
  0x15   :  { %77 = vmatpush.msra.mxu0 %v68_v4  ;;  %137 = vmatpush.msra.mxu1 %v68_v4 }
  0x17   :  { %78 = vmatpush.msra.mxu0 %v67_v5  ;;  %138 = vmatpush.msra.mxu1 %v67_v5 }
  0x19   :  { %79 = vmatpush.msra.mxu0 %v66_v6  ;;  %139 = vmatpush.msra.mxu1 %v66_v6 }
  0x1b   :  { %80 = vmatpush.msra.mxu0 %v65_v7  ;;  %140 = vmatpush.msra.mxu1 %v65_v7 }
  0x1d   :  { %81 = vmatpush.msra.mxu0 %v64_v8  ;;  %141 = vmatpush.msra.mxu1 %v64_v8 }
  0x1f   :  { %82 = vmatpush.msra.mxu0 %v63_v9  ;;  %142 = vmatpush.msra.mxu1 %v63_v9 }
  0x21   :  { %83 = vmatpush.msra.mxu0 %v62_v10  ;;  %143 = vmatpush.msra.mxu1 %v62_v10 }
  0x23   :  { %84 = vmatpush.msra.mxu0 %v61_v11  ;;  %144 = vmatpush.msra.mxu1 %v61_v11 }
  0x25   :  { %85 = vmatpush.msra.mxu0 %v60_v12  ;;  %145 = vmatpush.msra.mxu1 %v60_v12 }
  0x27   :  { %86 = vmatpush.msra.mxu0 %v59_v13  ;;  %146 = vmatpush.msra.mxu1 %v59_v13 }
  0x29   :  { %87 = vmatpush.msra.mxu0 %v58_v14  ;;  %147 = vmatpush.msra.mxu1 %v58_v14 }
  0x2b   :  { %88 = vmatpush.msra.mxu0 %v57_v15  ;;  %148 = vmatpush.msra.mxu1 %v57_v15 }
  0x2c   :  { %89 = vmatmul.f32.vlgmr.msra.gmra.mxu0 %v55_v16  ;;  %92 = vmatmul.f32.vlgmr.msra.gmra.mxu1 %v56_v17 }
  0xa9   :  { %v90_v19 = vpop.f32.mrf.mxu0  ;;  %v93_v20 = vpop.f32.mrf.mxu1 }
  0xaa   :  { %v109_v21 = vadd.f32 %v154_v18, %v90_v19  ;;  %v110_v22 = vadd.f32 %v154_v18, %v93_v20 }
  0xac   :  { %111 = vst [vmem:[#allocation8] sm:$0xff] %v109_v21 }
  0xad   :  { %112 = vst [vmem:[#allocation8 + $0x8] sm:$0xff] %v110_v22 }
  0xae   :  { %125 = dma.vmem_to_hbm [thread:$0]  %s118_s25, 256, %s120_s28, [#allocation5], %s234_s20, %s234_s20, %s235_s21  }
  0xaf   :  { %231 = dma.done.wait [#allocation5], 256  }
  0xb0   :  { %232 = vsyncadd [#allocation5], 4294967040 }
  0xb1   :  { %130 = vsyncpa [#allocation4], 1 }
  0xb2   :  { %131 = vsyncpa [#allocation7], 1 }
  0xb3   :  { %132 = vsyncpa [#allocation5], 1 }

</bundles_post_ra>
